<compile_context>
chip_gen: v7x
topology: tpu7x:2x2x1
jax: 0.10.0
libtpu: 0.0.40
codegen_flags: <defaults>
</compile_context>

<pallas_src>
import functools

import jax
import jax.numpy as jnp
from jax import lax
from jax.experimental import pallas as pl
from jax.experimental.pallas import tpu as pltpu

_TABLE_DTYPE = jnp.bfloat16   # half the table VMEM/HBM; gather via one-hot stays exact
_OUT_DTYPE = jnp.float32      # keep reference output precision (bf16 possible downstream)
_STREAM_V_TILE = 1024         # vocab tile for the streaming (large-table) fallback

# Flipped to False once if the running jax build rejects single-buffering via Buffered(1).
_BUFFERED_1_OK = True


def _round_up(x, m):
    return ((x + m - 1) // m) * m


def _offsets(dims):
    offs, o = [], 0
    for d in dims:
        offs.append(o)
        o += d
    return tuple(offs), o


def _max_row_tile():
    """tm upper bound per MXU depth: 512 on 256-deep MXUs (v6e/v7x), 256 otherwise."""
    try:
        kind = jax.devices()[0].device_kind.lower()
    except Exception:
        return 256
    for tag in ("v2", "v3", "v4", "v5"):
        if tag in kind:
            return 256
    return 512


def _pick_tm(M, tm_max):
    """Row tile: big enough to amortize ~0.35us/step, small enough to cap padding waste."""
    if M <= tm_max:
        return max(8, _round_up(M, 8))            # single grid step, <= 7 padded rows
    best_t, best_cost = None, None
    for t in (512, 256, 128, 64):
        if t > tm_max:
            continue
        steps = -(-M // t)
        cost = steps * t + steps * 48             # padded rows + per-step overhead (rows-equiv)
        if best_cost is None or cost < best_cost:
            best_t, best_cost = t, cost
    return best_t


def _vmem_budget_bytes():
    """Per-TensorCore budget for keeping the packed table VMEM-resident.  v7x has only
    64 MiB/TC and megacore duplicates the table per core -> conservative 48 MiB default."""
    try:
        cap = int(pltpu.get_tpu_info().vmem_capacity_bytes)
        return int(cap * 0.75)
    except Exception:
        return 48 << 20


# --------------------------------------------------------------------------- kernels


def _fused_kernel(dims, offs, ids_ref, w_ref, o_ref):
    """ids_ref: (tm, P) int32 | w_ref: (V, Dsum_pad) bf16, VMEM-resident (fetched once)
    o_ref: (tm, Dsum_pad) -- lane-dense stores (Dsum_pad % 128 == 0), group-packed."""
    tm = ids_ref.shape[0]
    V = w_ref.shape[0]
    dsum_pad = o_ref.shape[-1]
    ids = ids_ref[...]
    # One iota shared by every pipeline (hoisted; JAX does not CSE broadcasts).
    col = lax.broadcasted_iota(jnp.int32, (tm, V), 1)
    pieces = []
    for p, (off, d) in enumerate(zip(offs, dims)):
        # One-hot rebuilt in vregs (never read from HBM).  id == -1 (all-zero input row
        # or M-padding row) matches no column -> exact zero row, like one_hot @ W.
        onehot = (col == ids[:, p:p + 1]).astype(w_ref.dtype)            # (tm, V) bf16
        pieces.append(jnp.dot(onehot, w_ref[:, off:off + d],
                              preferred_element_type=jnp.float32))       # (tm, d) f32
    dsum = sum(dims)
    if dsum_pad > dsum:
        pieces.append(jnp.zeros((tm, dsum_pad - dsum), jnp.float32))
    # Pad the group (not each pipeline) to 128 lanes -> one unmasked 128-wide store path.
    o_ref[...] = jnp.concatenate(pieces, axis=-1).astype(o_ref.dtype)


def _streaming_kernel(dims, offs, ids_ref, w_ref, o_ref, acc_ref):
    """Vocab-tiled fallback when the packed table exceeds the VMEM budget.
    grid = (M tiles, V tiles); V is the reduction axis (last, 'arbitrary')."""
    k = pl.program_id(1)

    @pl.when(k == 0)
    def _():
        acc_ref[...] = jnp.zeros_like(acc_ref)

    tm = ids_ref.shape[0]
    tv = w_ref.shape[0]
    dsum_pad = o_ref.shape[-1]
    ids = ids_ref[...]
    col = lax.broadcasted_iota(jnp.int32, (tm, tv), 1) + k * tv
    pieces = []
    for p, (off, d) in enumerate(zip(offs, dims)):
        onehot = (col == ids[:, p:p + 1]).astype(w_ref.dtype)
        pieces.append(jnp.dot(onehot, w_ref[:, off:off + d],
                              preferred_element_type=jnp.float32))
    dsum = sum(dims)
    if dsum_pad > dsum:
        pieces.append(jnp.zeros((tm, dsum_pad - dsum), jnp.float32))
    acc_ref[...] += jnp.concatenate(pieces, axis=-1)

    @pl.when(k == pl.num_programs(1) - 1)
    def _():
        o_ref[...] = acc_ref[...].astype(o_ref.dtype)


# -------------------------------------------------------------------------- wrappers


def _fused_embed(ids_2d, w_packed, dims, tm, out_dtype):
    global _BUFFERED_1_OK
    M_pad, P = ids_2d.shape
    V, dsum_pad = w_packed.shape
    offs, dsum = _offsets(dims)
    grid = (M_pad // tm,)
    kernel = functools.partial(_fused_kernel, tuple(dims), offs)

    tbytes = V * dsum_pad * w_packed.dtype.itemsize
    obytes = M_pad * dsum_pad * jnp.dtype(out_dtype).itemsize
    ibytes = M_pad * P * 4
    cost = pl.CostEstimate(flops=2 * M_pad * V * dsum, transcendentals=0,
                           bytes_accessed=ibytes + tbytes + obytes)
    # On megacore parts "parallel" makes each TC hold + read its own table copy; only
    # worth it when the output stream (scales with M) dominates the table read.
    sem = ("parallel",) if obytes >= tbytes else ("arbitrary",)

    def vmem_limit(table_mult):
        need = (table_mult * tbytes
                + 2 * tm * _round_up(P, 128) * 4          # ids tiles (lane-padded)
                + 2 * tm * dsum_pad * 4                   # output tiles
                + 2 * tm * V * w_packed.dtype.itemsize    # live (tm, V) one-hot operands
                + (2 << 20))
        return int(min(max(2 * need, 32 << 20), _vmem_budget_bytes() + (8 << 20)))

    def build(single_buffer):
        # Constant-index table block: single-buffer it (no point double-buffering a
        # block that never changes) when the running jax build supports Buffered(1).
        w_kwargs = {"pipeline_mode": pl.Buffered(1)} if single_buffer else {}
        return pl.pallas_call(
            kernel,
            out_shape=jax.ShapeDtypeStruct((M_pad, dsum_pad), out_dtype),
            grid_spec=pltpu.PrefetchScalarGridSpec(
                num_scalar_prefetch=0,
                grid=grid,
                in_specs=[
                    pl.BlockSpec((tm, P), lambda i: (i, 0)),            # ids tile per step
                    pl.BlockSpec((V, dsum_pad), lambda i: (0, 0), **w_kwargs),
                ],
                out_specs=pl.BlockSpec((tm, dsum_pad), lambda i: (i, 0)),
            ),
            compiler_params=pltpu.CompilerParams(
                dimension_semantics=sem,
                vmem_limit_bytes=vmem_limit(1 if single_buffer else 2)),
            cost_estimate=cost,
        )(ids_2d, w_packed)

    if _BUFFERED_1_OK:
        try:
            return build(True)
        except Exception:
            _BUFFERED_1_OK = False   # fall back to default double-buffering of the table
    return build(False)


def _streaming_embed(ids_2d, w_packed, dims, tm, out_dtype):
    M_pad, P = ids_2d.shape
    V, dsum_pad = w_packed.shape
    offs, dsum = _offsets(dims)
    tv = min(_STREAM_V_TILE, _round_up(V, 8))
    V_pad = _round_up(V, tv)
    if V_pad != V:
        # ids never reference the zero-padded rows (ids < V), so results are unchanged.
        w_packed = jnp.pad(w_packed, ((0, V_pad - V), (0, 0)))
    grid = (M_pad // tm, V_pad // tv)
    kernel = functools.partial(_streaming_kernel, tuple(dims), offs)

    tbytes = V_pad * dsum_pad * w_packed.dtype.itemsize
    obytes = M_pad * dsum_pad * jnp.dtype(out_dtype).itemsize
    ibytes = M_pad * P * 4
    cost = pl.CostEstimate(flops=2 * M_pad * V_pad * dsum, transcendentals=0,
                           bytes_accessed=ibytes + tbytes * (M_pad // tm) + obytes)
    need = (2 * tv * dsum_pad * w_packed.dtype.itemsize
            + 2 * tm * _round_up(P, 128) * 4
            + 2 * tm * dsum_pad * 4 + tm * dsum_pad * 4
            + 2 * tm * tv * w_packed.dtype.itemsize + (2 << 20))
    vmem_limit = int(min(max(2 * need, 32 << 20), _vmem_budget_bytes() + (8 << 20)))

    return pl.pallas_call(
        kernel,
        out_shape=jax.ShapeDtypeStruct((M_pad, dsum_pad), out_dtype),
        grid_spec=pltpu.PrefetchScalarGridSpec(
            num_scalar_prefetch=0,
            grid=grid,
            in_specs=[
                pl.BlockSpec((tm, P), lambda i, k: (i, 0)),
                pl.BlockSpec((tv, dsum_pad), lambda i, k: (k, 0)),
            ],
            out_specs=pl.BlockSpec((tm, dsum_pad), lambda i, k: (i, 0)),
            scratch_shapes=[pltpu.VMEM((tm, dsum_pad), jnp.float32)],
        ),
        compiler_params=pltpu.CompilerParams(
            dimension_semantics=("parallel", "arbitrary"),
            vmem_limit_bytes=vmem_limit),
        cost_estimate=cost,
    )(ids_2d, w_packed)


def _group_embed(ids_2d, w_packed, dims, *, force_streaming=False, out_dtype=_OUT_DTYPE):
    """ids_2d: (M, P) int32 (id -1 => exact zero row) | w_packed: (V, Dsum_pad) bf16.
    Returns (M_pad, Dsum_pad); pipeline p lives in columns [offs[p], offs[p]+dims[p])."""
    M, P = ids_2d.shape
    V, dsum_pad = w_packed.shape
    assert len(dims) == P and sum(dims) <= dsum_pad and dsum_pad % 128 == 0
    tm = _pick_tm(M, _max_row_tile())
    M_pad = _round_up(M, tm)
    if M_pad != M:
        ids_2d = jnp.pad(ids_2d, ((0, M_pad - M), (0, 0)), constant_values=-1)
    table_mult = 1 if _BUFFERED_1_OK else 2
    fused_need = (table_mult * V * dsum_pad * w_packed.dtype.itemsize
                  + 2 * tm * _round_up(P, 128) * 4
                  + 2 * tm * dsum_pad * jnp.dtype(out_dtype).itemsize
                  + 2 * tm * V * w_packed.dtype.itemsize
                  + (2 << 20))
    if force_streaming or fused_need > _vmem_budget_bytes():
        # TODO(synk): for very large vocabularies a scalar-prefetch / manual-DMA row
        # gather (touching only the referenced rows) beats this streamed one-hot matmul,
        # which keeps VMEM bounded but still performs O(M*V*D) MXU work.
        return _streaming_embed(ids_2d, w_packed, dims, tm, out_dtype)
    return _fused_embed(ids_2d, w_packed, dims, tm, out_dtype)


# ---------------------------------------------------------------------------- module


class SpEncoderPallas:
    """Concrete spEncoder: pipelines convert one-hot (or integer-id) tensors to dense
    embeddings.  forward() keeps the reference semantics
        output_dict[k] = pipeline_k(x[input_mapping[k]])
    but computes all same-vocab / same-shape pipelines with one fused pallas_call whose
    output is group-packed along the lane axis."""

    def __init__(self, arg):
        if not isinstance(arg, dict):
            arg = vars(arg)
        self.pipeline_dict = None
        self.input_mapping = None
        self.build_pipelines(arg)

    def build_pipelines(self, arg):
        # Deterministic synthetic weights (the reference leaves build_pipelines abstract).
        self.pipeline_dict = {}
        self.input_mapping = {}
        self.weights = {}            # name -> (V, D) float32 master copy
        self._vocab_groups = {}      # vocab -> [names]
        self._packed_cache = {}      # tuple(names) -> packed bf16 table + layout
        key = jax.random.PRNGKey(42)
        for name, spec in arg["pipelines"].items():
            vocab, dim = spec["vocab"], spec["dim"]
            key, sub = jax.random.split(key)
            self.weights[name] = jax.random.normal(sub, (vocab, dim), jnp.float32) * 0.02
            self.input_mapping[name] = spec["input"]
            self.pipeline_dict[name] = functools.partial(self._run_single, name)
            self._vocab_groups.setdefault(vocab, []).append(name)

    def _packed_table(self, names):
        """Group-packed bf16 table (V, round_up(sum(D_i), 128)): pad the group, not each
        pipeline, so both the table and the output stay lane-dense without 128/D waste."""
        names = tuple(names)
        if names not in self._packed_cache:
            dims = tuple(self.weights[n].shape[1] for n in names)
            offs, dsum = _offsets(dims)
            dsum_pad = _round_up(dsum, 128)
            V = self.weights[names[0]].shape[0]
            pieces = [self.weights[n].astype(_TABLE_DTYPE) for n in names]
            if dsum_pad > dsum:
                pieces.append(jnp.zeros((V, dsum_pad - dsum), _TABLE_DTYPE))
            self._packed_cache[names] = {
                "w_packed": jnp.concatenate(pieces, axis=1),
                "dims": dims, "offs": offs, "dsum_pad": dsum_pad,
            }
        return self._packed_cache[names]

    @staticmethod
    def _to_ids(inp):
        # Integer ids (B, S) are used directly; a one-hot (B, S, V) is collapsed in the
        # wrapper (the kernel never reads the one-hot from HBM).  All-zero rows map to
        # id = -1 -> exact zero embedding, matching one_hot @ W semantics.
        if jnp.issubdtype(inp.dtype, jnp.integer) and inp.ndim == 2:
            return inp.astype(jnp.int32)
        idx = jnp.argmax(inp, axis=-1).astype(jnp.int32)
        return jnp.where(jnp.max(inp, axis=-1) > 0, idx, jnp.int32(-1))

    def _run_single(self, name, inp):
        # Per-pipeline path (same kernel, P = 1), kept for API parity with the reference.
        ids = self._to_ids(inp)
        B, S = ids.shape
        entry = self._packed_table((name,))
        dense = _group_embed(ids.reshape(-1, 1), entry["w_packed"], entry["dims"])
        d = entry["dims"][0]
        return dense[:B * S, :d].reshape(B, S, d)

    def forward(self, x):
        output_dict = {}
        for vocab, names in self._vocab_groups.items():
            # Pipelines fused together must share the ids shape; bucket by shape so
            # mismatched configurations still run (in separate fused calls).
            buckets = {}
            for n in names:
                ids = self._to_ids(x[self.input_mapping[n]])
                buckets.setdefault(ids.shape, []).append((n, ids))
            for (B, S), items in buckets.items():
                sub = tuple(n for n, _ in items)
                entry = self._packed_table(sub)
                ids_2d = jnp.stack([i.reshape(-1) for _, i in items], axis=1)   # (M, P)
                dense = _group_embed(ids_2d, entry["w_packed"], entry["dims"])
                for (n, _), off, d in zip(items, entry["offs"], entry["dims"]):
                    output_dict[n] = dense[:B * S, off:off + d].reshape(B, S, d)
        return output_dict

    __call__ = forward


if __name__ == "__main__":
    # Small shapes: batch=2, seq=8, vocab=128, embed dim=32, two pipelines.
    B, S, V, D = 2, 8, 128, 32
    arg = {
        "pipelines": {
            "word": {"vocab": V, "dim": D, "input": "word_onehot"},
            "pos":  {"vocab": V, "dim": D, "input": "pos_onehot"},
        }
    }
    enc = SpEncoderPallas(arg)

    key = jax.random.PRNGKey(0)
    k1, k2 = jax.random.split(key)
    word_ids = jax.random.randint(k1, (B, S), 0, V)
    pos_ids = jax.random.randint(k2, (B, S), 0, V)
    x = {
        "word_onehot": jax.nn.one_hot(word_ids, V, dtype=jnp.float32),
        "pos_onehot": jax.nn.one_hot(pos_ids, V, dtype=jnp.float32),
    }

    out = enc(x)
    jax.block_until_ready(out)

    # Reference checks.  The table is stored in bf16 so compare exactly against the
    # bf16-rounded weights, and loosely against the full-f32 reference.
    for name, spec in arg["pipelines"].items():
        w_bf16 = enc.weights[name].astype(jnp.bfloat16).astype(jnp.float32)
        ref_bf16 = jnp.einsum("bsv,vd->bsd", x[spec["input"]], w_bf16)
        ref_f32 = jnp.einsum("bsv,vd->bsd", x[spec["input"]], enc.weights[name])
        assert out[name].shape == (B, S, D)
        assert jnp.allclose(out[name], ref_bf16, atol=1e-5), f"mismatch in {name}"
        assert jnp.allclose(out[name], ref_f32, atol=1e-3), f"f32 drift in {name}"

    # Per-pipeline API path (P = 1).
    single = enc.pipeline_dict["word"](x["word_onehot"])
    assert jnp.allclose(single, out["word"], atol=1e-5)

    # All-zero one-hot row -> exact zero embedding (one_hot @ W semantics).
    x_zero = dict(x)
    x_zero["word_onehot"] = x["word_onehot"].at[0, 0].set(0.0)
    out_zero = enc(x_zero)
    assert jnp.allclose(out_zero["word"][0, 0], 0.0), "all-zero row must embed to zeros"

    # Exercise the large-vocab streaming fallback and confirm it matches the fused path.
    entry = enc._packed_table(("word", "pos"))
    ids_2d = jnp.stack([word_ids.reshape(-1), pos_ids.reshape(-1)], axis=1).astype(jnp.int32)
    fused = _group_embed(ids_2d, entry["w_packed"], entry["dims"])
    streamed = _group_embed(ids_2d, entry["w_packed"], entry["dims"], force_streaming=True)
    jax.block_until_ready((fused, streamed))
    assert jnp.allclose(fused, streamed, atol=1e-5), "streaming fallback mismatch"

    print("KERNEL_OK")
</pallas_src>

<mosaic_0001>
module attributes {stable_mosaic.version = 11 : i64} {
  func.func @_fused_kernel(%arg0: i32, %arg1: memref<16x2xi32, #tpu.memory_space<vmem>>, %arg2: memref<128x128xbf16, #tpu.memory_space<vmem>>, %arg3: memref<16x128xf32, #tpu.memory_space<vmem>>) attributes {dimension_semantics = [#tpu.dimension_semantics<arbitrary>], iteration_bounds = array<i64: 1>, scalar_prefetch = 0 : i64, scratch_operands = 0 : i64, tpu.core_type = #tpu.core_type<tc>, window_params = [{transform_indices = @transform_0, window_bounds = array<i64: 16, 2>}, {pipeline_mode = #tpu.pipeline_mode<synchronous>, transform_indices = @transform_1, window_bounds = array<i64: 128, 128>}, {transform_indices = @transform_2, window_bounds = array<i64: 16, 128>}]} {
    %c0 = arith.constant 0 : index
    %c0_0 = arith.constant 0 : index
    %0 = vector.load %arg1[%c0, %c0_0] : memref<16x2xi32, #tpu.memory_space<vmem>>, vector<16x2xi32>
    %1 = tpu.iota {dimensions = array<i32: 1>} : vector<16x128xi32>
    %2 = vector.extract_strided_slice %0 {offsets = [0, 0], sizes = [16, 1], strides = [1, 1]} : vector<16x2xi32> to vector<16x1xi32>
    %3 = vector.broadcast %2 : vector<16x1xi32> to vector<16x128xi32>
    %4 = arith.cmpi eq, %1, %3 : vector<16x128xi32>
    %5 = arith.extui %4 : vector<16x128xi1> to vector<16x128xi32>
    %6 = arith.sitofp %5 : vector<16x128xi32> to vector<16x128xf32>
    %7 = arith.truncf %6 : vector<16x128xf32> to vector<16x128xbf16>
    %c0_1 = arith.constant 0 : index
    %c0_2 = arith.constant 0 : index
    %8 = vector.load %arg2[%c0_1, %c0_2] : memref<128x128xbf16, #tpu.memory_space<vmem>>, vector<128x32xbf16>
    %cst = arith.constant dense<0.000000e+00> : vector<16x32xf32>
    %9 = tpu.matmul %7, %8, %cst {dimension_numbers = #tpu.dot_dimension_numbers<[1], [0], [0], [1], [0, 0, 1, 1], [], []>} : vector<16x128xbf16>, vector<128x32xbf16>, vector<16x32xf32> -> vector<16x32xf32>
    %10 = vector.extract_strided_slice %0 {offsets = [0, 1], sizes = [16, 1], strides = [1, 1]} : vector<16x2xi32> to vector<16x1xi32>
    %11 = vector.broadcast %10 : vector<16x1xi32> to vector<16x128xi32>
    %12 = arith.cmpi eq, %1, %11 : vector<16x128xi32>
    %13 = arith.extui %12 : vector<16x128xi1> to vector<16x128xi32>
    %14 = arith.sitofp %13 : vector<16x128xi32> to vector<16x128xf32>
    %15 = arith.truncf %14 : vector<16x128xf32> to vector<16x128xbf16>
    %c0_3 = arith.constant 0 : index
    %c32 = arith.constant 32 : index
    %16 = vector.load %arg2[%c0_3, %c32] : memref<128x128xbf16, #tpu.memory_space<vmem>>, vector<128x32xbf16>
    %cst_4 = arith.constant dense<0.000000e+00> : vector<16x32xf32>
    %17 = tpu.matmul %15, %16, %cst_4 {dimension_numbers = #tpu.dot_dimension_numbers<[1], [0], [0], [1], [0, 0, 1, 1], [], []>} : vector<16x128xbf16>, vector<128x32xbf16>, vector<16x32xf32> -> vector<16x32xf32>
    %cst_5 = arith.constant 0.000000e+00 : f32
    %18 = vector.broadcast %cst_5 : f32 to vector<16x64xf32>
    %19 = tpu.concatenate %9, %17, %18 in 1 : vector<16x32xf32>, vector<16x32xf32>, vector<16x64xf32> -> vector<16x128xf32>
    %c0_6 = arith.constant 0 : index
    %c0_7 = arith.constant 0 : index
    %20 = vector.load %arg3[%c0_6, %c0_7] : memref<16x128xf32, #tpu.memory_space<vmem>>, vector<16x128xf32>
    tpu.vector_store %arg3[%c0_6, %c0_7], %19 {strides = array<i32>} : memref<16x128xf32, #tpu.memory_space<vmem>>, vector<16x128xf32>,
    return
  }
  func.func @transform_0(%arg0: i32) -> (i32, i32) {
    %c0_i32 = arith.constant 0 : i32
    %c0_i32_0 = arith.constant 0 : i32
    return %arg0, %c0_i32 : i32, i32
  }
  func.func @transform_1(%arg0: i32) -> (i32, i32) {
    %c0_i32 = arith.constant 0 : i32
    %c0_i32_0 = arith.constant 0 : i32
    %c0_i32_1 = arith.constant 0 : i32
    return %c0_i32, %c0_i32_0 : i32, i32
  }
  func.func @transform_2(%arg0: i32) -> (i32, i32) {
    %c0_i32 = arith.constant 0 : i32
    %c0_i32_0 = arith.constant 0 : i32
    return %arg0, %c0_i32 : i32, i32
  }
}

module attributes {stable_mosaic.version = 11 : i64} {
  func.func @_fused_kernel(%arg0: i32, %arg1: memref<16x2xi32, #tpu.memory_space<vmem>>, %arg2: memref<128x128xbf16, #tpu.memory_space<vmem>>, %arg3: memref<16x128xf32, #tpu.memory_space<vmem>>) attributes {dimension_semantics = [#tpu.dimension_semantics<arbitrary>], iteration_bounds = array<i64: 1>, scalar_prefetch = 0 : i64, scratch_operands = 0 : i64, tpu.core_type = #tpu.core_type<tc>, window_params = [{transform_indices = @transform_0, window_bounds = array<i64: 16, 2>}, {pipeline_mode = #tpu.pipeline_mode<synchronous>, transform_indices = @transform_1, window_bounds = array<i64: 128, 128>}, {transform_indices = @transform_2, window_bounds = array<i64: 16, 128>}]} {
    %c0 = arith.constant 0 : index
    %c0_0 = arith.constant 0 : index
    %0 = vector.load %arg1[%c0, %c0_0] : memref<16x2xi32, #tpu.memory_space<vmem>>, vector<16x2xi32>
    %1 = tpu.iota {dimensions = array<i32: 1>} : vector<16x128xi32>
    %2 = vector.extract_strided_slice %0 {offsets = [0, 0], sizes = [16, 1], strides = [1, 1]} : vector<16x2xi32> to vector<16x1xi32>
    %3 = vector.broadcast %2 : vector<16x1xi32> to vector<16x128xi32>
    %4 = arith.cmpi eq, %1, %3 : vector<16x128xi32>
    %5 = arith.extui %4 : vector<16x128xi1> to vector<16x128xi32>
    %6 = arith.sitofp %5 : vector<16x128xi32> to vector<16x128xf32>
    %7 = arith.truncf %6 : vector<16x128xf32> to vector<16x128xbf16>
    %c0_1 = arith.constant 0 : index
    %c0_2 = arith.constant 0 : index
    %8 = vector.load %arg2[%c0_1, %c0_2] : memref<128x128xbf16, #tpu.memory_space<vmem>>, vector<128x32xbf16>
    %cst = arith.constant dense<0.000000e+00> : vector<16x32xf32>
    %9 = tpu.matmul %7, %8, %cst {dimension_numbers = #tpu.dot_dimension_numbers<[1], [0], [0], [1], [0, 0, 1, 1], [], []>} : vector<16x128xbf16>, vector<128x32xbf16>, vector<16x32xf32> -> vector<16x32xf32>
    %10 = vector.extract_strided_slice %0 {offsets = [0, 1], sizes = [16, 1], strides = [1, 1]} : vector<16x2xi32> to vector<16x1xi32>
    %11 = vector.broadcast %10 : vector<16x1xi32> to vector<16x128xi32>
    %12 = arith.cmpi eq, %1, %11 : vector<16x128xi32>
    %13 = arith.extui %12 : vector<16x128xi1> to vector<16x128xi32>
    %14 = arith.sitofp %13 : vector<16x128xi32> to vector<16x128xf32>
    %15 = arith.truncf %14 : vector<16x128xf32> to vector<16x128xbf16>
    %c0_3 = arith.constant 0 : index
    %c32 = arith.constant 32 : index
    %16 = vector.load %arg2[%c0_3, %c32] : memref<128x128xbf16, #tpu.memory_space<vmem>>, vector<128x32xbf16>
    %cst_4 = arith.constant dense<0.000000e+00> : vector<16x32xf32>
    %17 = tpu.matmul %15, %16, %cst_4 {dimension_numbers = #tpu.dot_dimension_numbers<[1], [0], [0], [1], [0, 0, 1, 1], [], []>} : vector<16x128xbf16>, vector<128x32xbf16>, vector<16x32xf32> -> vector<16x32xf32>
    %cst_5 = arith.constant 0.000000e+00 : f32
    %18 = vector.broadcast %cst_5 : f32 to vector<16x64xf32>
    %19 = tpu.concatenate %9, %17, %18 in 1 : vector<16x32xf32>, vector<16x32xf32>, vector<16x64xf32> -> vector<16x128xf32>
    %c0_6 = arith.constant 0 : index
    %c0_7 = arith.constant 0 : index
    %20 = vector.load %arg3[%c0_6, %c0_7] : memref<16x128xf32, #tpu.memory_space<vmem>>, vector<16x128xf32>
    tpu.vector_store %arg3[%c0_6, %c0_7], %19 {strides = array<i32>} : memref<16x128xf32, #tpu.memory_space<vmem>>, vector<16x128xf32>,
    return
  }
  func.func @transform_0(%arg0: i32) -> (i32, i32) {
    %c0_i32 = arith.constant 0 : i32
    %c0_i32_0 = arith.constant 0 : i32
    return %arg0, %c0_i32 : i32, i32
  }
  func.func @transform_1(%arg0: i32) -> (i32, i32) {
    %c0_i32 = arith.constant 0 : i32
    %c0_i32_0 = arith.constant 0 : i32
    %c0_i32_1 = arith.constant 0 : i32
    return %c0_i32, %c0_i32_0 : i32, i32
  }
  func.func @transform_2(%arg0: i32) -> (i32, i32) {
    %c0_i32 = arith.constant 0 : i32
    %c0_i32_0 = arith.constant 0 : i32
    return %arg0, %c0_i32 : i32, i32
  }
}

</mosaic_0001>

<bundles_post_ra>
// kernel: tpu_custom_call.1
= control target key start
LH: loop header
LB: loop body
LE: loop exit
PB: predicated region body
PF: predicated region fallthrough
CT: control target
= control target key end

     0   :  { %7 = vsyncpa [#allocation3], 0  ;;  %s484_s0 = inlined_call_operand.vmem [shape: s32[16,2], index: 0, kind: input, shape index: {}]   ;;  %s485_s1 = inlined_call_operand.hbm [shape: bf16[128,128], index: 1, kind: input, shape index: {}]   ;;  %s486_s2 = inlined_call_operand.hbm [shape: f32[16,128], index: 2, kind: output, shape index: {}]  }
   0x1   :  { %8 = vsyncpa [#allocation4], 0  ;;  %s408_s9 = smov [#allocation2]   ;;  %s360_s13 = scalar_lea.hbm %s485_s1, 1024 }
   0x2   :  { %s16_s10 = sshll.u32 %s408_s9, 4  ;;  %p361_p0 = scmp.ne.s32.totalorder %s485_s1, %s360_s13  ;;  %s17_s10 = int_to_ptr.vmem [resolvable:$true] %s16_s10 }
   0x3   :  { %p364_p1 = scmp.lt.u32.totalorder %s360_s13, %s485_s1 }
   0x5   :  { %p366_p2 = pnand %p364_p1, %p361_p0 }
   0x7   :  { %369 = shalt.err (!%p366_p2)
}
   0x8   :  { %s370_s18 = scalar_lea.vmem %s17_s10, 1024  ;;  %p375_p4 = scmp.lt.s32.totalorder %s17_s10, %s17_s10 }
   0x9   :  { %p371_p3 = scmp.ne.s32.totalorder %s17_s10, %s370_s18  ;;  %p376_p5 = scmp.lt.s32.totalorder %s370_s18, %s370_s18 }
   0xb   :  { %p377_p6 = por %p376_p5, %p375_p4 }
   0xd   :  { %p378_p7 = pnand %p377_p6, %p371_p3 }
   0xf   :  { %381 = shalt.err (!%p378_p7)
}
  0x10   :  { %s409_s19 = smov 64   ;;  %s410_s20 = smov 4  }
  0x11   :  { %22 = dma.hbm_to_vmem [thread:$0]  %s485_s1, 1024, %s17_s10, [#allocation3], %s409_s19, %s409_s19, %s410_s20  }
  0x12   :  { %404 = dma.done.wait [#allocation3], 1024  }
  0x13   :  { %405 = vsyncadd [#allocation3], 4294966272  ;;  %v411_v0 = vmov 1   ;;  %v412_v1 = vmov 0.0   ;;  %v352_v2 = vld [vmem:[#allocation2 + $0x10] sm:$0xff]   ;;  %v353_v3 = vld [vmem:[#allocation2] sm:$0xff]   ;;  %v29_v19 = vlaneseq }
  0x14   :  { %348 = vset.pattern.permute.xlu1 %v411_v0  ;;  %347 = vset.pattern.permute.xlu0 %v411_v0  ;;  %s413_s23 = smov 96   ;;  %v354_v4 = vld [vmem:[#allocation2 + $0x18] sm:$0xff]   ;;  %v355_v5 = vld [vmem:[#allocation2 + $0x8] sm:$0xff]   ;;  %v357_v7 = vld [vmem:[#allocation2 + $0x20] sm:$0xff]   ;;  %v414_v12 = vmov 0   ;;  %vm415_vm0 = vmmov 0  }
  0x15   :  { %314 = vmatprep.subr.bf16.mxu1 %v412_v1  ;;  %294 = vmatprep.subr.bf16.mxu0 %v412_v1  ;;  %v356_v6 = vld [vmem:[#allocation2 + $0x28] sm:$0xff]   ;;  %v27_v9 = vld [vmem:[%s484_s0] sm:$0xff]  ;;  %v358_v10 = vld [vmem:[#allocation2 + $0x30] sm:$0xff]   ;;  %v30_v22 = vand.u32 127, %v29_v19  ;;  %v416_v27 = vmov 1.0|1.0  }
  0x16   :  { %166 = vrot.lane.b32.xlu1 %v352_v2, %s413_s23  ;;  %162 = vrot.lane.b32.xlu0 %v353_v3, %s413_s23  ;;  %v28_v8 = vld [vmem:[%s484_s0 + $0x8] sm:$0xff]  ;;  %v359_v11 = vld [vmem:[#allocation2 + $0x38] sm:$0xff]   ;;  %s417_s0 = smov 32   ;;  %vm235_vm7 = vcmask 261120   ;;  %vm238_vm8 = vcmask 523264   ;;  %s418_s27 = smov [#allocation5]  }
  0x17   :  { %295 = vmatpush3.bf16.msra.mxu0 %v353_v3  ;;  %330 = vmatprep.mubr.msk.bf16.mxu1 %vm415_vm0, %v412_v1  ;;  %s248_s28 = sshll.u32 %s418_s27, 4  ;;  %s249_s28 = int_to_ptr.vmem [resolvable:$true] %s248_s28 }
  0x18   :  { %296 = vmatprep.subr.bf16.mxu0 %v412_v1  ;;  %310 = vmatprep.mubr.msk.bf16.mxu0 %vm415_vm0, %v412_v1  ;;  %s382_s29 = scalar_lea.vmem %s249_s28, 256  ;;  %p387_p9 = scmp.lt.s32.totalorder %s249_s28, %s249_s28 }
  0x19   :  { %p383_p8 = scmp.ne.s32.totalorder %s249_s28, %s382_s29  ;;  %p388_p10 = scmp.lt.s32.totalorder %s382_s29, %s382_s29 }
  0x1a   :  { %168 = vrot.lane.b32.xlu1 %v354_v4, %s413_s23  ;;  %164 = vrot.lane.b32.xlu0 %v355_v5, %s413_s23 }
  0x1b   :  { %297 = vmatpush3.bf16.msra.mxu0 %v355_v5  ;;  %p389_p11 = por %p388_p10, %p387_p9 }
  0x1c   :  { %298 = vmatprep.subr.bf16.mxu0 %v412_v1 }
  0x1d   :  { %p390_p12 = pnand %p389_p11, %p383_p8 }
  0x1e   :  { %172 = vrot.lane.b32.xlu1 %v356_v6, %s413_s23  ;;  %170 = vrot.lane.b32.xlu0 %v357_v7, %s413_s23 }
  0x1f   :  { %299 = vmatpush3.bf16.msra.mxu0 %v352_v2 }
  0x20   :  { %300 = vmatprep.subr.bf16.mxu0 %v412_v1 }
  0x22   :  { %153 = vperm.xlu1 %348, %v28_v8   ;;  %150 = vperm.xlu0 %347, %v27_v9  }
  0x23   :  { %301 = vmatpush3.bf16.msra.mxu0 %v354_v4 }
  0x24   :  { %302 = vmatprep.subr.bf16.mxu0 %v412_v1 }
  0x26   :  { %174 = vrot.lane.b32.xlu1 %v358_v10, %s413_s23  ;;  %176 = vrot.lane.b32.xlu0 %v359_v11, %s413_s23 }
  0x27   :  { %349 = vset.pattern.permute.xlu1 %v414_v12  ;;  %350 = vset.pattern.permute.xlu0 %v414_v12 }
  0x28   :  { %303 = vmatpush3.bf16.msra.mxu0 %v357_v7 }
  0x29   :  { %304 = vmatprep.subr.bf16.mxu0 %v412_v1 }
  0x2a   :  { %32 = vperm.xlu1 %349, %v27_v9   ;;  %35 = vperm.xlu0 %350, %v28_v8  }
  0x2c   :  { %305 = vmatpush3.bf16.msra.mxu0 %v356_v6 }
  0x2d   :  { %306 = vmatprep.subr.bf16.mxu0 %v412_v1 }
  0x2e   :  { %351 = vset.pattern.permute.xlu0 %v411_v0 }
  0x30   :  { %307 = vmatpush3.bf16.msra.mxu0 %v358_v10 }
  0x31   :  { %308 = vmatprep.subr.bf16.mxu0 %v412_v1 }
  0x34   :  { %309 = vmatpush3.bf16.msra.mxu0 %v359_v11 }
  0x88   :  { %v163_v13 = vpop.permute.xlu0 %162  ;;  %v167_v15 = vpop.permute.xlu1 %166 }
  0x89   :  { %315 = vmatpush3.bf16.msra.mxu1 %v163_v13 }
  0x8a   :  { %316 = vmatprep.subr.bf16.mxu1 %v412_v1 }
  0x8c   :  { %v165_v14 = vpop.permute.xlu0 %164  ;;  %v169_v16 = vpop.permute.xlu1 %168 }
  0x8d   :  { %317 = vmatpush3.bf16.msra.mxu1 %v165_v14 }
  0x8e   :  { %318 = vmatprep.subr.bf16.mxu1 %v412_v1 }
  0x90   :  { %v171_v17 = vpop.permute.xlu0 %170  ;;  %v173_v18 = vpop.permute.xlu1 %172 }
  0x91   :  { %319 = vmatpush3.bf16.msra.mxu1 %v167_v15 }
  0x92   :  { %320 = vmatprep.subr.bf16.mxu1 %v412_v1 }
  0x95   :  { %321 = vmatpush3.bf16.msra.mxu1 %v169_v16 }
  0x96   :  { %322 = vmatprep.subr.bf16.mxu1 %v412_v1 }
  0x99   :  { %323 = vmatpush3.bf16.msra.mxu1 %v171_v17 }
  0x9a   :  { %324 = vmatprep.subr.bf16.mxu1 %v412_v1 }
  0x9d   :  { %325 = vmatpush3.bf16.msra.mxu1 %v173_v18 }
  0x9e   :  { %326 = vmatprep.subr.bf16.mxu1 %v412_v1 }
  0xa1   :  { %v154_v20 = vpop.permute.xlu1 %153  ;;  %v151_v21 = vpop.permute.xlu0 %150 }
  0xa2   :  { %vm156_vm1 = vcmp.eq.s32.totalorder %v30_v22, %v154_v20  ;;  %vm155_vm2 = vcmp.eq.s32.totalorder %v30_v22, %v151_v21 }
  0xa3   :  { %vm274_vm4 = vmpackc.low %vm156_vm1, %vm155_vm2 }
  0xa5   :  { %v175_v23 = vpop.permute.xlu1 %174  ;;  %v177_v24 = vpop.permute.xlu0 %176 }
  0xa6   :  { %327 = vmatpush3.bf16.msra.mxu1 %v175_v23 }
  0xa7   :  { %328 = vmatprep.subr.bf16.mxu1 %v412_v1 }
  0xa9   :  { %v33_v25 = vpop.permute.xlu1 %32  ;;  %v36_v26 = vpop.permute.xlu0 %35 }
  0xaa   :  { %329 = vmatpush3.bf16.msra.mxu1 %v177_v24  ;;  %vm37_vm3 = vcmp.eq.s32.totalorder %v30_v22, %v33_v25  ;;  %vm38_vm5 = vcmp.eq.s32.totalorder %v30_v22, %v36_v26 }
  0xab   :  { %vm270_vm6 = vmpackc.low %vm38_vm5, %vm37_vm3 }
  0xac   :  { %311 = vmatmul.mubr.msk.bf16.vlgmr.msra.gmra.mrb[0].mxu0 %vm270_vm6, %v416_v27 }
  0xad   :  { %331 = vmatmul.mubr.msk.bf16.vlgmr.msra.gmra.mrb[0].mxu1 %vm274_vm4, %v416_v27 }
 0x17f   :  { %v142_v29 = vpop.f32.mrb[0].mxu0 }
 0x180   :  { %v220_v28 = vpop.f32.mrb[0].mxu1  ;;  %v312_v31 = vpop.f32.mrb[1].mxu0 }
 0x181   :  { %229 = vrot.lane.b32.xlu1 %v220_v28, %s417_s0  ;;  %v332_v30 = vpop.f32.mrb[1].mxu1  ;;  %v145_v33 = vpop.f32.mrb[2].mxu0 }
 0x182   :  { %v223_v32 = vpop.f32.mrb[2].mxu1  ;;  %v313_v35 = vpop.f32.mrb[3].mxu0 }
 0x183   :  { %v333_v34 = vpop.f32.mrb[3].mxu1 }
 0x185   :  { %231 = vrot.lane.b32.xlu1 %v223_v32, %s417_s0 }
 0x1f3   :  { %v230_v36 = vpop.permute.xlu1 %229 }
 0x1f4   :  { %v236_v37 = vsel %vm235_vm7, %v142_v29, %v230_v36 }
 0x1f5   :  { %v239_v38 = vsel %vm238_vm8, %v236_v37, 0.0 }
 0x1f6   :  { %241 = vst [vmem:[#allocation5] sm:$0xff] %v239_v38 }
 0x1f7   :  { %v232_v39 = vpop.permute.xlu1 %231 }
 0x1f8   :  { %v237_v40 = vsel %vm235_vm7, %v145_v33, %v232_v39 }
 0x1f9   :  { %v240_v41 = vsel %vm238_vm8, %v237_v40, 0.0 }
 0x1fa   :  { %242 = vst [vmem:[#allocation5 + $0x8] sm:$0xff] %v240_v41 }
 0x1fb   :  { %393 = shalt.err (!%p390_p12)
}
 0x1fc   :  { %s394_s4 = scalar_lea.hbm %s486_s2, 256 }
 0x1fd   :  { %p395_p13 = scmp.ne.s32.totalorder %s486_s2, %s394_s4  ;;  %p398_p0 = scmp.lt.u32.totalorder %s394_s4, %s486_s2 }
 0x1ff   :  { %p400_p1 = pnand %p398_p0, %p395_p13 }
 0x201   :  { %403 = shalt.err (!%p400_p1)
}
 0x202   :  { %s419_s9 = smov 128   ;;  %s420_s10 = smov 8  }
 0x203   :  { %254 = dma.vmem_to_hbm [thread:$0]  %s249_s28, 256, %s486_s2, [#allocation4], %s419_s9, %s419_s9, %s420_s10  }
 0x204   :  { %406 = dma.done.wait [#allocation4], 256  }
 0x205   :  { %407 = vsyncadd [#allocation4], 4294967040 }
 0x206   :  { %258 = vsyncpa [#allocation3], 1 }
 0x207   :  { %259 = vsyncpa [#allocation4], 1 }

// kernel: tpu_custom_call.1
= control target key start
LH: loop header
LB: loop body
LE: loop exit
PB: predicated region body
PF: predicated region fallthrough
CT: control target
= control target key end

     0   :  { %7 = vsyncpa [#allocation3], 0  ;;  %s484_s0 = inlined_call_operand.vmem [shape: s32[16,2], index: 0, kind: input, shape index: {}]   ;;  %s485_s1 = inlined_call_operand.hbm [shape: bf16[128,128], index: 1, kind: input, shape index: {}]   ;;  %s486_s2 = inlined_call_operand.hbm [shape: f32[16,128], index: 2, kind: output, shape index: {}]  }
   0x1   :  { %8 = vsyncpa [#allocation4], 0  ;;  %s408_s9 = smov [#allocation2]   ;;  %s360_s13 = scalar_lea.hbm %s485_s1, 1024 }
   0x2   :  { %s16_s10 = sshll.u32 %s408_s9, 4  ;;  %p361_p0 = scmp.ne.s32.totalorder %s485_s1, %s360_s13  ;;  %s17_s10 = int_to_ptr.vmem [resolvable:$true] %s16_s10 }
   0x3   :  { %p364_p1 = scmp.lt.u32.totalorder %s360_s13, %s485_s1 }
   0x5   :  { %p366_p2 = pnand %p364_p1, %p361_p0 }
   0x7   :  { %369 = shalt.err (!%p366_p2)
}
   0x8   :  { %s370_s18 = scalar_lea.vmem %s17_s10, 1024  ;;  %p375_p4 = scmp.lt.s32.totalorder %s17_s10, %s17_s10 }
   0x9   :  { %p371_p3 = scmp.ne.s32.totalorder %s17_s10, %s370_s18  ;;  %p376_p5 = scmp.lt.s32.totalorder %s370_s18, %s370_s18 }
   0xb   :  { %p377_p6 = por %p376_p5, %p375_p4 }
   0xd   :  { %p378_p7 = pnand %p377_p6, %p371_p3 }
   0xf   :  { %381 = shalt.err (!%p378_p7)
}
  0x10   :  { %s409_s19 = smov 64   ;;  %s410_s20 = smov 4  }
  0x11   :  { %22 = dma.hbm_to_vmem [thread:$0]  %s485_s1, 1024, %s17_s10, [#allocation3], %s409_s19, %s409_s19, %s410_s20  }
  0x12   :  { %404 = dma.done.wait [#allocation3], 1024  }
  0x13   :  { %405 = vsyncadd [#allocation3], 4294966272  ;;  %v411_v0 = vmov 1   ;;  %v412_v1 = vmov 0.0   ;;  %v352_v2 = vld [vmem:[#allocation2 + $0x10] sm:$0xff]   ;;  %v353_v3 = vld [vmem:[#allocation2] sm:$0xff]   ;;  %v29_v19 = vlaneseq }
  0x14   :  { %348 = vset.pattern.permute.xlu1 %v411_v0  ;;  %347 = vset.pattern.permute.xlu0 %v411_v0  ;;  %s413_s23 = smov 96   ;;  %v354_v4 = vld [vmem:[#allocation2 + $0x18] sm:$0xff]   ;;  %v355_v5 = vld [vmem:[#allocation2 + $0x8] sm:$0xff]   ;;  %v357_v7 = vld [vmem:[#allocation2 + $0x20] sm:$0xff]   ;;  %v414_v12 = vmov 0   ;;  %vm415_vm0 = vmmov 0  }
  0x15   :  { %314 = vmatprep.subr.bf16.mxu1 %v412_v1  ;;  %294 = vmatprep.subr.bf16.mxu0 %v412_v1  ;;  %v356_v6 = vld [vmem:[#allocation2 + $0x28] sm:$0xff]   ;;  %v27_v9 = vld [vmem:[%s484_s0] sm:$0xff]  ;;  %v358_v10 = vld [vmem:[#allocation2 + $0x30] sm:$0xff]   ;;  %v30_v22 = vand.u32 127, %v29_v19  ;;  %v416_v27 = vmov 1.0|1.0  }
  0x16   :  { %166 = vrot.lane.b32.xlu1 %v352_v2, %s413_s23  ;;  %162 = vrot.lane.b32.xlu0 %v353_v3, %s413_s23  ;;  %v28_v8 = vld [vmem:[%s484_s0 + $0x8] sm:$0xff]  ;;  %v359_v11 = vld [vmem:[#allocation2 + $0x38] sm:$0xff]   ;;  %s417_s0 = smov 32   ;;  %vm235_vm7 = vcmask 261120   ;;  %vm238_vm8 = vcmask 523264   ;;  %s418_s27 = smov [#allocation5]  }
  0x17   :  { %295 = vmatpush3.bf16.msra.mxu0 %v353_v3  ;;  %330 = vmatprep.mubr.msk.bf16.mxu1 %vm415_vm0, %v412_v1  ;;  %s248_s28 = sshll.u32 %s418_s27, 4  ;;  %s249_s28 = int_to_ptr.vmem [resolvable:$true] %s248_s28 }
  0x18   :  { %296 = vmatprep.subr.bf16.mxu0 %v412_v1  ;;  %310 = vmatprep.mubr.msk.bf16.mxu0 %vm415_vm0, %v412_v1  ;;  %s382_s29 = scalar_lea.vmem %s249_s28, 256  ;;  %p387_p9 = scmp.lt.s32.totalorder %s249_s28, %s249_s28 }
  0x19   :  { %p383_p8 = scmp.ne.s32.totalorder %s249_s28, %s382_s29  ;;  %p388_p10 = scmp.lt.s32.totalorder %s382_s29, %s382_s29 }
  0x1a   :  { %168 = vrot.lane.b32.xlu1 %v354_v4, %s413_s23  ;;  %164 = vrot.lane.b32.xlu0 %v355_v5, %s413_s23 }
  0x1b   :  { %297 = vmatpush3.bf16.msra.mxu0 %v355_v5  ;;  %p389_p11 = por %p388_p10, %p387_p9 }
  0x1c   :  { %298 = vmatprep.subr.bf16.mxu0 %v412_v1 }
  0x1d   :  { %p390_p12 = pnand %p389_p11, %p383_p8 }
  0x1e   :  { %172 = vrot.lane.b32.xlu1 %v356_v6, %s413_s23  ;;  %170 = vrot.lane.b32.xlu0 %v357_v7, %s413_s23 }
  0x1f   :  { %299 = vmatpush3.bf16.msra.mxu0 %v352_v2 }
  0x20   :  { %300 = vmatprep.subr.bf16.mxu0 %v412_v1 }
  0x22   :  { %153 = vperm.xlu1 %348, %v28_v8   ;;  %150 = vperm.xlu0 %347, %v27_v9  }
  0x23   :  { %301 = vmatpush3.bf16.msra.mxu0 %v354_v4 }
  0x24   :  { %302 = vmatprep.subr.bf16.mxu0 %v412_v1 }
  0x26   :  { %174 = vrot.lane.b32.xlu1 %v358_v10, %s413_s23  ;;  %176 = vrot.lane.b32.xlu0 %v359_v11, %s413_s23 }
  0x27   :  { %349 = vset.pattern.permute.xlu1 %v414_v12  ;;  %350 = vset.pattern.permute.xlu0 %v414_v12 }
  0x28   :  { %303 = vmatpush3.bf16.msra.mxu0 %v357_v7 }
  0x29   :  { %304 = vmatprep.subr.bf16.mxu0 %v412_v1 }
  0x2a   :  { %32 = vperm.xlu1 %349, %v27_v9   ;;  %35 = vperm.xlu0 %350, %v28_v8  }
  0x2c   :  { %305 = vmatpush3.bf16.msra.mxu0 %v356_v6 }
  0x2d   :  { %306 = vmatprep.subr.bf16.mxu0 %v412_v1 }
  0x2e   :  { %351 = vset.pattern.permute.xlu0 %v411_v0 }
  0x30   :  { %307 = vmatpush3.bf16.msra.mxu0 %v358_v10 }
  0x31   :  { %308 = vmatprep.subr.bf16.mxu0 %v412_v1 }
  0x34   :  { %309 = vmatpush3.bf16.msra.mxu0 %v359_v11 }
  0x88   :  { %v163_v13 = vpop.permute.xlu0 %162  ;;  %v167_v15 = vpop.permute.xlu1 %166 }
  0x89   :  { %315 = vmatpush3.bf16.msra.mxu1 %v163_v13 }
  0x8a   :  { %316 = vmatprep.subr.bf16.mxu1 %v412_v1 }
  0x8c   :  { %v165_v14 = vpop.permute.xlu0 %164  ;;  %v169_v16 = vpop.permute.xlu1 %168 }
  0x8d   :  { %317 = vmatpush3.bf16.msra.mxu1 %v165_v14 }
  0x8e   :  { %318 = vmatprep.subr.bf16.mxu1 %v412_v1 }
  0x90   :  { %v171_v17 = vpop.permute.xlu0 %170  ;;  %v173_v18 = vpop.permute.xlu1 %172 }
  0x91   :  { %319 = vmatpush3.bf16.msra.mxu1 %v167_v15 }
  0x92   :  { %320 = vmatprep.subr.bf16.mxu1 %v412_v1 }
  0x95   :  { %321 = vmatpush3.bf16.msra.mxu1 %v169_v16 }
  0x96   :  { %322 = vmatprep.subr.bf16.mxu1 %v412_v1 }
  0x99   :  { %323 = vmatpush3.bf16.msra.mxu1 %v171_v17 }
  0x9a   :  { %324 = vmatprep.subr.bf16.mxu1 %v412_v1 }
  0x9d   :  { %325 = vmatpush3.bf16.msra.mxu1 %v173_v18 }
  0x9e   :  { %326 = vmatprep.subr.bf16.mxu1 %v412_v1 }
  0xa1   :  { %v154_v20 = vpop.permute.xlu1 %153  ;;  %v151_v21 = vpop.permute.xlu0 %150 }
  0xa2   :  { %vm156_vm1 = vcmp.eq.s32.totalorder %v30_v22, %v154_v20  ;;  %vm155_vm2 = vcmp.eq.s32.totalorder %v30_v22, %v151_v21 }
  0xa3   :  { %vm274_vm4 = vmpackc.low %vm156_vm1, %vm155_vm2 }
  0xa5   :  { %v175_v23 = vpop.permute.xlu1 %174  ;;  %v177_v24 = vpop.permute.xlu0 %176 }
  0xa6   :  { %327 = vmatpush3.bf16.msra.mxu1 %v175_v23 }
  0xa7   :  { %328 = vmatprep.subr.bf16.mxu1 %v412_v1 }
  0xa9   :  { %v33_v25 = vpop.permute.xlu1 %32  ;;  %v36_v26 = vpop.permute.xlu0 %35 }
  0xaa   :  { %329 = vmatpush3.bf16.msra.mxu1 %v177_v24  ;;  %vm37_vm3 = vcmp.eq.s32.totalorder %v30_v22, %v33_v25  ;;  %vm38_vm5 = vcmp.eq.s32.totalorder %v30_v22, %v36_v26 }
  0xab   :  { %vm270_vm6 = vmpackc.low %vm38_vm5, %vm37_vm3 }
  0xac   :  { %311 = vmatmul.mubr.msk.bf16.vlgmr.msra.gmra.mrb[0].mxu0 %vm270_vm6, %v416_v27 }
  0xad   :  { %331 = vmatmul.mubr.msk.bf16.vlgmr.msra.gmra.mrb[0].mxu1 %vm274_vm4, %v416_v27 }
 0x17f   :  { %v142_v29 = vpop.f32.mrb[0].mxu0 }
 0x180   :  { %v220_v28 = vpop.f32.mrb[0].mxu1  ;;  %v312_v31 = vpop.f32.mrb[1].mxu0 }
 0x181   :  { %229 = vrot.lane.b32.xlu1 %v220_v28, %s417_s0  ;;  %v332_v30 = vpop.f32.mrb[1].mxu1  ;;  %v145_v33 = vpop.f32.mrb[2].mxu0 }
 0x182   :  { %v223_v32 = vpop.f32.mrb[2].mxu1  ;;  %v313_v35 = vpop.f32.mrb[3].mxu0 }
 0x183   :  { %v333_v34 = vpop.f32.mrb[3].mxu1 }
 0x185   :  { %231 = vrot.lane.b32.xlu1 %v223_v32, %s417_s0 }
 0x1f3   :  { %v230_v36 = vpop.permute.xlu1 %229 }
 0x1f4   :  { %v236_v37 = vsel %vm235_vm7, %v142_v29, %v230_v36 }
 0x1f5   :  { %v239_v38 = vsel %vm238_vm8, %v236_v37, 0.0 }
 0x1f6   :  { %241 = vst [vmem:[#allocation5] sm:$0xff] %v239_v38 }
 0x1f7   :  { %v232_v39 = vpop.permute.xlu1 %231 }
 0x1f8   :  { %v237_v40 = vsel %vm235_vm7, %v145_v33, %v232_v39 }
 0x1f9   :  { %v240_v41 = vsel %vm238_vm8, %v237_v40, 0.0 }
 0x1fa   :  { %242 = vst [vmem:[#allocation5 + $0x8] sm:$0xff] %v240_v41 }
 0x1fb   :  { %393 = shalt.err (!%p390_p12)
}
 0x1fc   :  { %s394_s4 = scalar_lea.hbm %s486_s2, 256 }
 0x1fd   :  { %p395_p13 = scmp.ne.s32.totalorder %s486_s2, %s394_s4  ;;  %p398_p0 = scmp.lt.u32.totalorder %s394_s4, %s486_s2 }
 0x1ff   :  { %p400_p1 = pnand %p398_p0, %p395_p13 }
 0x201   :  { %403 = shalt.err (!%p400_p1)
}
 0x202   :  { %s419_s9 = smov 128   ;;  %s420_s10 = smov 8  }
 0x203   :  { %254 = dma.vmem_to_hbm [thread:$0]  %s249_s28, 256, %s486_s2, [#allocation4], %s419_s9, %s419_s9, %s420_s10  }
 0x204   :  { %406 = dma.done.wait [#allocation4], 256  }
 0x205   :  { %407 = vsyncadd [#allocation4], 4294967040 }
 0x206   :  { %258 = vsyncpa [#allocation3], 1 }
 0x207   :  { %259 = vsyncpa [#allocation4], 1 }

</bundles_post_ra>
